<compile_context>
chip_gen: v5e
topology: v5e:2x2
jax: 0.10.0
libtpu: 0.0.40
codegen_flags: <defaults>
</compile_context>

<pallas_src>
import functools

import jax
import jax.numpy as jnp
from jax.experimental import pallas as pl
from jax.experimental.pallas import tpu as pltpu


# ---------------------------------------------------------------------------
# Kernel
# ---------------------------------------------------------------------------
def _emb_kernel(p_ref, w_ref, pos_ref, o_ref):
    # p_ref  : (bpt, N+1, K)  patches; token row 0 is all-zero (cls placeholder)
    # w_ref  : (K, D)         flattened conv weight (contracting dim on sublanes)
    # pos_ref: (N+1, D)       row 0 = cls + pos[0]; rows 1.. = pos[1:] + conv bias
    # o_ref  : (bpt, N+1, D)  output tokens (full aligned slab store)
    bpt = p_ref.shape[0]
    w = w_ref[...]
    pos = pos_ref[...]
    for b in range(bpt):  # static, small (<= ~8); each iter is a plain 2-D MXU matmul
        acc = jnp.dot(p_ref[b], w, preferred_element_type=jnp.float32)
        o_ref[b] = (acc + pos).astype(o_ref.dtype)


# ---------------------------------------------------------------------------
# Tiling heuristics
# ---------------------------------------------------------------------------
def _round_up(x, m):
    return ((x + m - 1) // m) * m


def _vmem_block_bytes(shape, dtype):
    """Rough padded VMEM footprint of one buffer of `shape` (lane=128, sublane tile)."""
    itemsize = jnp.dtype(dtype).itemsize
    sub = 8 * max(1, 4 // itemsize)  # 8 for f32, 16 for bf16, 32 for int8
    s = list(shape)
    if len(s) >= 1:
        s[-1] = _round_up(s[-1], 128)
    if len(s) >= 2:
        s[-2] = _round_up(s[-2], sub)
    n = 1
    for v in s:
        n *= v
    return n * itemsize


def _choose_bpt(B, Np, K, D, compute_dtype, out_dtype,
                *, target_rows=768, vmem_budget=24 << 20):
    """Batch elements per grid step: ~target_rows matmul rows, grid>=2 (v7x two
    TensorCores), and double-buffered tiles within a conservative VMEM budget."""
    cap = max(1, target_rows // max(Np, 1))
    if B >= 2:
        cap = min(cap, B // 2)
    cap = max(1, min(cap, B))

    const_bytes = (2 * _vmem_block_bytes((K, D), compute_dtype)
                   + 2 * _vmem_block_bytes((Np, D), jnp.float32))

    def need(bpt):
        return (const_bytes
                + 2 * _vmem_block_bytes((bpt, Np, K), compute_dtype)
                + 2 * _vmem_block_bytes((bpt, Np, D), out_dtype))

    for bpt in range(cap, 0, -1):
        if B % bpt:
            continue
        n = need(bpt)
        if n <= vmem_budget:
            return bpt, n
    return 1, need(1)


# ---------------------------------------------------------------------------
# pallas_call wrapper
# ---------------------------------------------------------------------------
def patch_embed_pallas(patches, w_flat, pos_table, *, out_dtype=jnp.float32,
                       target_rows=768):
    """patches: (B, N+1, K) with token row 0 zero; w_flat: (K, D); pos_table: (N+1, D)."""
    B, Np, K = patches.shape
    D = w_flat.shape[1]

    bpt, vmem_need = _choose_bpt(B, Np, K, D, patches.dtype, out_dtype,
                                 target_rows=target_rows)
    grid = (B // bpt,)

    out_itemsize = jnp.dtype(out_dtype).itemsize
    cost = pl.CostEstimate(
        flops=2 * B * Np * K * D,
        transcendentals=0,
        bytes_accessed=(patches.size * patches.dtype.itemsize
                        + w_flat.size * w_flat.dtype.itemsize
                        + pos_table.size * pos_table.dtype.itemsize
                        + B * Np * D * out_itemsize),
    )
    vmem_limit = int(min(64 << 20, max(32 << 20, vmem_need + (8 << 20))))

    return pl.pallas_call(
        _emb_kernel,
        out_shape=jax.ShapeDtypeStruct((B, Np, D), out_dtype),
        grid_spec=pltpu.PrefetchScalarGridSpec(
            num_scalar_prefetch=0,
            grid=grid,
            in_specs=[
                pl.BlockSpec((bpt, Np, K), lambda i: (i, 0, 0)),  # streaming patches
                pl.BlockSpec((K, D), lambda i: (0, 0)),           # shared weight (fetched once)
                pl.BlockSpec((Np, D), lambda i: (0, 0)),          # pos table (fetched once)
            ],
            out_specs=pl.BlockSpec((bpt, Np, D), lambda i: (i, 0, 0)),
        ),
        compiler_params=pltpu.CompilerParams(
            dimension_semantics=("parallel",),
            vmem_limit_bytes=vmem_limit),
        cost_estimate=cost,
    )(patches, w_flat, pos_table)


# ---------------------------------------------------------------------------
# Glue (module-level forward)
# ---------------------------------------------------------------------------
def prepare_embedding_params(conv_w, conv_b, cls_token, pos_embed,
                             *, compute_dtype=jnp.bfloat16):
    """Call ONCE (outside the per-step hot path). Folds bias/cls into a pos table
    and flattens the conv weight into MXU layout."""
    D = conv_w.shape[0]
    K = conv_w.shape[1] * conv_w.shape[2] * conv_w.shape[3]
    w_flat = conv_w.reshape(D, K).T.astype(compute_dtype)          # (K, D)
    pos_table = jnp.concatenate(
        [cls_token[0] + pos_embed[0, :1, :],                        # row 0: cls + pos[0]
         pos_embed[0, 1:, :] + conv_b[None, :]], axis=0)            # rows 1..: pos + bias
    return w_flat, pos_table.astype(jnp.float32)


def embedding_forward(x, w_flat, pos_table, patch_size, *, out_dtype=jnp.float32):
    """x: (B, C, H, W) NCHW, matching the PyTorch module's forward.
    Returns (B, N+1, D) tokens (cls token in row 0), pos-embedding applied."""
    B, C, H, W = x.shape
    p = patch_size
    Gh, Gw = H // p, W // p
    N = Gh * Gw
    K, D = w_flat.shape
    assert pos_table.shape == (N + 1, D)

    # Unfold NCHW -> (B, N, K): row-major over the patch grid (matches
    # flatten(2).transpose(1,2)), channel-major within a patch (matches the
    # Conv2d weight layout (D, C, p, p)).  Cast to the compute dtype and prepend
    # one zero token row per batch element so the kernel's output store is a
    # single aligned slab (row 0 gets the folded cls+pos row from pos_table).
    xp = x.reshape(B, C, Gh, p, Gw, p).transpose(0, 2, 4, 1, 3, 5).reshape(B, N, K)
    xp = jnp.pad(xp.astype(w_flat.dtype), ((0, 0), (1, 0), (0, 0)))  # (B, N+1, K)

    return patch_embed_pallas(xp, w_flat, pos_table, out_dtype=out_dtype)


# ---------------------------------------------------------------------------
# Demo / self-check
# ---------------------------------------------------------------------------
if __name__ == "__main__":
    # Small config consistent with the module: img 16x16, patch 4, 4 channels, D=32.
    # NOTE: D=32 (< 128 lanes) means masked lane stores here; real ViT D=768 is
    # lane-dense so no change needed there.
    B, C, img_size, patch_size, D = 2, 4, 16, 4, 32
    G = img_size // patch_size
    N = G * G                          # 16 patches
    K = C * patch_size * patch_size    # 64

    key = jax.random.PRNGKey(0)
    kx, kw, kb, kc, kp = jax.random.split(key, 5)

    x = jax.random.normal(kx, (B, C, img_size, img_size), dtype=jnp.float32)
    conv_w = jax.random.normal(kw, (D, C, patch_size, patch_size), dtype=jnp.float32) * 0.05
    conv_b = jax.random.normal(kb, (D,), dtype=jnp.float32) * 0.05
    # The module zero-inits these; use small random values so the add path is exercised.
    cls_token = jax.random.normal(kc, (1, 1, D), dtype=jnp.float32) * 0.02
    pos_embed = jax.random.normal(kp, (1, N + 1, D), dtype=jnp.float32) * 0.02

    # Reference in plain JAX (strided conv == patch matmul).
    ref_patches = jax.lax.conv_general_dilated(
        x, conv_w, window_strides=(patch_size, patch_size), padding="VALID",
        dimension_numbers=("NCHW", "OIHW", "NCHW")) + conv_b[None, :, None, None]
    ref_patches = ref_patches.reshape(B, D, N).transpose(0, 2, 1)
    ref = jnp.concatenate(
        [jnp.broadcast_to(cls_token, (B, 1, D)), ref_patches], axis=1) + pos_embed

    fwd = jax.jit(functools.partial(embedding_forward, patch_size=patch_size))

    # 1) f32 operands: exact-tolerance check of kernel math and token layout.
    w32, pos32 = prepare_embedding_params(conv_w, conv_b, cls_token, pos_embed,
                                          compute_dtype=jnp.float32)
    out32 = jax.block_until_ready(fwd(x, w32, pos32))
    assert out32.shape == (B, N + 1, D), out32.shape
    assert jnp.allclose(out32, ref, atol=1e-4, rtol=1e-4)

    # 2) bf16 operands (production default): looser tolerance (expected quantization).
    wbf, posbf = prepare_embedding_params(conv_w, conv_b, cls_token, pos_embed)
    outbf = jax.block_until_ready(fwd(x, wbf, posbf))
    assert outbf.shape == (B, N + 1, D), outbf.shape
    assert jnp.allclose(outbf, ref, atol=5e-2, rtol=5e-2)

    print("KERNEL_OK")
</pallas_src>

<mosaic_0001>
module attributes {stable_mosaic.version = 11 : i64} {
  func.func @_emb_kernel(%arg0: i32, %arg1: memref<1x17x64xf32, #tpu.memory_space<vmem>>, %arg2: memref<64x32xf32, #tpu.memory_space<vmem>>, %arg3: memref<17x32xf32, #tpu.memory_space<vmem>>, %arg4: memref<1x17x32xf32, #tpu.memory_space<vmem>>) attributes {dimension_semantics = [#tpu.dimension_semantics<parallel>], iteration_bounds = array<i64: 2>, scalar_prefetch = 0 : i64, scratch_operands = 0 : i64, tpu.core_type = #tpu.core_type<tc>, window_params = [{transform_indices = @transform_0, window_bounds = array<i64: 1, 17, 64>}, {pipeline_mode = #tpu.pipeline_mode<synchronous>, transform_indices = @transform_1, window_bounds = array<i64: 64, 32>}, {pipeline_mode = #tpu.pipeline_mode<synchronous>, transform_indices = @transform_2, window_bounds = array<i64: 17, 32>}, {transform_indices = @transform_3, window_bounds = array<i64: 1, 17, 32>}]} {
    %c0 = arith.constant 0 : index
    %c0_0 = arith.constant 0 : index
    %0 = vector.load %arg2[%c0, %c0_0] : memref<64x32xf32, #tpu.memory_space<vmem>>, vector<64x32xf32>
    %c0_1 = arith.constant 0 : index
    %c0_2 = arith.constant 0 : index
    %1 = vector.load %arg3[%c0_1, %c0_2] : memref<17x32xf32, #tpu.memory_space<vmem>>, vector<17x32xf32>
    %c0_3 = arith.constant 0 : index
    %c0_4 = arith.constant 0 : index
    %c0_5 = arith.constant 0 : index
    %2 = vector.load %arg1[%c0_3, %c0_4, %c0_5] : memref<1x17x64xf32, #tpu.memory_space<vmem>>, vector<1x17x64xf32>
    %3 = vector.shape_cast %2 : vector<1x17x64xf32> to vector<17x64xf32>
    %cst = arith.constant dense<0.000000e+00> : vector<17x32xf32>
    %4 = tpu.matmul %3, %0, %cst {dimension_numbers = #tpu.dot_dimension_numbers<[1], [0], [0], [1], [0, 0, 1, 1], [], []>} : vector<17x64xf32>, vector<64x32xf32>, vector<17x32xf32> -> vector<17x32xf32>
    %5 = arith.addf %4, %1 : vector<17x32xf32>
    %c0_6 = arith.constant 0 : index
    %c0_7 = arith.constant 0 : index
    %c0_8 = arith.constant 0 : index
    %6 = vector.load %arg4[%c0_6, %c0_7, %c0_8] : memref<1x17x32xf32, #tpu.memory_space<vmem>>, vector<1x17x32xf32>
    %7 = vector.shape_cast %6 : vector<1x17x32xf32> to vector<17x32xf32>
    %8 = vector.shape_cast %5 : vector<17x32xf32> to vector<1x17x32xf32>
    tpu.vector_store %arg4[%c0_6, %c0_7, %c0_8], %8 {strides = array<i32>} : memref<1x17x32xf32, #tpu.memory_space<vmem>>, vector<1x17x32xf32>,
    return
  }
  func.func @transform_0(%arg0: i32) -> (i32, i32, i32) {
    %c0_i32 = arith.constant 0 : i32
    %c0_i32_0 = arith.constant 0 : i32
    %c0_i32_1 = arith.constant 0 : i32
    return %arg0, %c0_i32, %c0_i32_0 : i32, i32, i32
  }
  func.func @transform_1(%arg0: i32) -> (i32, i32) {
    %c0_i32 = arith.constant 0 : i32
    %c0_i32_0 = arith.constant 0 : i32
    %c0_i32_1 = arith.constant 0 : i32
    return %c0_i32, %c0_i32_0 : i32, i32
  }
  func.func @transform_2(%arg0: i32) -> (i32, i32) {
    %c0_i32 = arith.constant 0 : i32
    %c0_i32_0 = arith.constant 0 : i32
    %c0_i32_1 = arith.constant 0 : i32
    return %c0_i32, %c0_i32_0 : i32, i32
  }
  func.func @transform_3(%arg0: i32) -> (i32, i32, i32) {
    %c0_i32 = arith.constant 0 : i32
    %c0_i32_0 = arith.constant 0 : i32
    %c0_i32_1 = arith.constant 0 : i32
    return %arg0, %c0_i32, %c0_i32_0 : i32, i32, i32
  }
}

</mosaic_0001>

<bundles_post_ra>
// kernel: embedding_forward.1
= control target key start
LH: loop header
LB: loop body
LE: loop exit
PB: predicated region body
PF: predicated region fallthrough
CT: control target
= control target key end

     0   :  { %s346_s12 = smov 0   ;;  %s403_s0 = inlined_call_operand.vmem [shape: f32[2,17,64], index: 0, kind: input, shape index: {}]   ;;  %s404_s1 = inlined_call_operand.vmem [shape: f32[64,32], index: 1, kind: input, shape index: {}]   ;;  %s405_s2 = inlined_call_operand.vmem [shape: f32[17,32], index: 2, kind: input, shape index: {}]   ;;  %s406_s3 = inlined_call_operand.vmem [shape: f32[2,17,32], index: 3, kind: output, shape index: {}]  }
   0x1 LB: > { %s281_s13 = sadd.s32 4294967295, %s324_s12   ;;  %p285_p0 = scmp.ge.s32.totalorder %s324_s12, 1  ;;  %s324_s12 = sphi %s346_s12, %s13_s12  }
   0x2   : > { %p137_p1 = scmp.lt.s32.totalorder %s324_s12, 3 }
   0x4   : > { %p138_p2 = pnand %p285_p0, %p137_p1 }
   0x5   : > { %p161_p3 = scmp.lt.s32.totalorder (!%p138_p2), %s281_s13, 1 }
   0x6   : > { %141 = sbr.rel (%p138_p2) target bundleno = 162 (0xa2), region = 32 }
   0xb   : > { %v178_v0 = vld [vmem:[%s404_s1 + $0x38] sm:$0xff]  ;;  %v177_v1 = vld [vmem:[%s404_s1 + $0x30] sm:$0xff]  ;;  %v176_v2 = vld [vmem:[%s404_s1 + $0x28] sm:$0xff]  ;;  %s408_s13 = smov (!%p161_p3, %s281_s13), 1  ;;  %vm185_vm0 = vcmask 523264   ;;  %vm221_vm1 = vcmask 261120  }
   0xc   : > { %294 = vmatpush.msra.mxu2 %v178_v0  ;;  %203 = vmatpush.msra.mxu0 %v178_v0  ;;  %v175_v3 = vld [vmem:[%s404_s1 + $0x20] sm:$0xff]  ;;  %v174_v4 = vld [vmem:[%s404_s1 + $0x18] sm:$0xff]  ;;  %s309_s24 = smul.u32 24, %s408_s13  ;;  %v173_v5 = vld [vmem:[%s404_s1 + $0x10] sm:$0xff]  ;;  %vm224_vm2 = vcmask 253952  }
   0xd   : > { %293 = vmatpush.msra.mxu1 %v178_v0  ;;  %v172_v6 = vld [vmem:[%s404_s1 + $0x8] sm:$0xff]  ;;  %v171_v7 = vld [vmem:[%s404_s1] sm:$0xff]  ;;  %v181_v17 = vld [vmem:[%s405_s2 + $0x10] sm:$0x1] }
   0xe   : > { %296 = vmatpush.msra.mxu2 %v177_v1  ;;  %204 = vmatpush.msra.mxu0 %v177_v1  ;;  %s165_s4 = scalar_lea.vmem %s403_s0, %s309_s24  ;;  %v179_v11 = vld [vmem:[%s405_s2] sm:$0xff]  ;;  %v180_v12 = vld [vmem:[%s405_s2 + $0x8] sm:$0xff]  ;;  %s170_s15 = scalar_lea.vmem %s406_s3, %s309_s24 }
   0xf   : > { %295 = vmatpush.msra.mxu1 %v177_v1  ;;  %v184_v8 = vld [vmem:[%s165_s4 + $0x10] sm:$0x1]  ;;  %v182_v9 = vld [vmem:[%s165_s4] sm:$0xff]  ;;  %v183_v10 = vld [vmem:[%s165_s4 + $0x8] sm:$0xff] }
  0x10   : > { %298 = vmatpush.msra.mxu2 %v176_v2  ;;  %205 = vmatpush.msra.mxu0 %v176_v2 }
  0x11   : > { %297 = vmatpush.msra.mxu1 %v176_v2 }
  0x12   : > { %300 = vmatpush.msra.mxu2 %v175_v3  ;;  %206 = vmatpush.msra.mxu0 %v175_v3 }
  0x13   : > { %299 = vmatpush.msra.mxu1 %v175_v3 }
  0x14   : > { %302 = vmatpush.msra.mxu2 %v174_v4  ;;  %207 = vmatpush.msra.mxu0 %v174_v4 }
  0x15   : > { %301 = vmatpush.msra.mxu1 %v174_v4 }
  0x16   : > { %304 = vmatpush.msra.mxu2 %v173_v5  ;;  %208 = vmatpush.msra.mxu0 %v173_v5 }
  0x17   : > { %303 = vmatpush.msra.mxu1 %v173_v5 }
  0x18   : > { %306 = vmatpush.msra.mxu2 %v172_v6  ;;  %209 = vmatpush.msra.mxu0 %v172_v6 }
  0x19   : > { %305 = vmatpush.msra.mxu1 %v172_v6 }
  0x1a   : > { %308 = vmatpush.msra.mxu2 %v171_v7  ;;  %210 = vmatpush.msra.mxu0 %v171_v7 }
  0x1b   : > { %290 = vmatmul.msk.f32.vlgmr.msra.gmra.mxu2 %vm185_vm0, %v184_v8  ;;  %307 = vmatpush.msra.mxu1 %v171_v7 }
  0x1c   : > { %288 = vmatmul.msk.f32.vlgmr.msra.gmra.mxu0 %vm185_vm0, %v182_v9  ;;  %289 = vmatmul.msk.f32.vlgmr.msra.gmra.mxu1 %vm185_vm0, %v183_v10 }
  0x99   : > { %v212_v13 = vpop.f32.mrf.mxu0  ;;  %v215_v14 = vpop.f32.mrf.mxu1 }
  0x9a   : > { %v213_v15 = vadd.f32 %v212_v13, %v179_v11  ;;  %v216_v16 = vadd.f32 %v215_v14, %v180_v12 }
  0x9c   : > { %222 = vst.msk [vmem:[%s170_s15] sm:$0xff] %vm221_vm1, %v213_v15 }
  0x9d   : > { %223 = vst.msk [vmem:[%s170_s15 + $0x8] sm:$0xff] %vm221_vm1, %v216_v16 }
  0x9e   : > { %v218_v18 = vpop.f32.mrf.mxu2 }
  0x9f   : > { %v219_v19 = vadd.f32 %v218_v18, %v181_v17 }
  0xa1   : > { %225 = vst.msk [vmem:[%s170_s15 + $0x10] sm:$0x1] %vm224_vm2, %v219_v19 }
  0xa2 PF: > { %s13_s12 = sadd.s32 1, %s324_s12  }
  0xa3   : > { %p10_p4 = scmp.ge.s32.totalorder %s13_s12, 4  }
  0xa5   :  { %12 = sbr.rel (!%p10_p4) target bundleno = 1 (0x1), region = 62 }

</bundles_post_ra>
